<compile_context>
chip_gen: v7x
topology: tpu7x:2x2x1
jax: 0.10.0
libtpu: 0.0.40
codegen_flags: <defaults>
</compile_context>

<pallas_src>
import functools

import jax
import jax.numpy as jnp
from jax import lax
from jax.experimental import pallas as pl
from jax.experimental.pallas import tpu as pltpu


STATE_SPACE = 11
HIDDEN = 128
ACTION_SPACE = 4

# Contract the last dim of both operands: activations are (rows, in) and the
# weights stay in PyTorch (out, in) layout -> the "trans_b" form the MXU
# consumes for free.
_TRANS_B = (((1,), (1,)), ((), ()))


def _round_up(n, m):
    return ((n + m - 1) // m) * m


def _policy_kernel(x_ref, w1_ref, b1_ref, w3_ref, b3_ref, w2_ref, b2_ref, o_ref):
    # (TB, 11) f32 tile straight from HBM; cast to bf16 for the MXU in-kernel.
    x = x_ref[...].astype(jnp.bfloat16)

    # fc1 + ReLU: (TB, 11) x (128, 11)^T -> (TB, 128), f32 accumulate.
    h1 = lax.dot_general(x, w1_ref[...], _TRANS_B,
                         preferred_element_type=jnp.float32) + b1_ref[...]
    h1 = jnp.maximum(h1, 0.0)

    # fc3 + ReLU: (TB, 128) x (128, 128)^T -> (TB, 128).
    h2 = lax.dot_general(h1.astype(jnp.bfloat16), w3_ref[...], _TRANS_B,
                         preferred_element_type=jnp.float32) + b3_ref[...]
    h2 = jnp.maximum(h2, 0.0)

    # fc2 (logits): (TB, 128) x (4, 128)^T -> (TB, 4).
    logits = lax.dot_general(h2.astype(jnp.bfloat16), w2_ref[...], _TRANS_B,
                             preferred_element_type=jnp.float32) + b2_ref[...]

    # Numerically stable softmax over the action axis (axis 1, size 4).
    m = jnp.max(logits, axis=1, keepdims=True)
    e = jnp.exp(logits - m)
    denom = jnp.sum(e, axis=1, keepdims=True)
    o_ref[...] = (e * pl.reciprocal(denom, approx=True)).astype(o_ref.dtype)


@functools.partial(jax.jit, static_argnames=("tile_b", "out_dtype"))
def policy_forward(x, w1, b1, w3, b3, w2, b2, *, tile_b=4096,
                   out_dtype=jnp.float32):
    """x: (B, 11) float32 -> (B, 4) softmax probabilities (out_dtype).

    Weights are in PyTorch layout (out_features, in_features), bf16.
    Biases are (1, out_features), f32.
    """
    B = x.shape[0]
    tb = min(_round_up(tile_b, 128), _round_up(B, 128))
    Bp = _round_up(B, tb)
    grid = (Bp // tb,)

    # Only pad when the batch is ragged w.r.t. the tile (skip the HBM copy in
    # the aligned case).
    if Bp != B:
        x = jnp.pad(x, ((0, Bp - B), (0, 0)))

    cost = pl.CostEstimate(
        flops=2 * Bp * (STATE_SPACE * HIDDEN + HIDDEN * HIDDEN
                        + HIDDEN * ACTION_SPACE),
        transcendentals=5 * Bp,  # 4 exp + 1 reciprocal per row
        bytes_accessed=(Bp * STATE_SPACE * 4                        # x (f32)
                        + Bp * ACTION_SPACE * jnp.dtype(out_dtype).itemsize
                        + (HIDDEN * STATE_SPACE + HIDDEN * HIDDEN
                           + ACTION_SPACE * HIDDEN) * 2             # weights bf16
                        + (2 * HIDDEN + ACTION_SPACE) * 4),         # biases f32
    )

    out = pl.pallas_call(
        _policy_kernel,
        out_shape=jax.ShapeDtypeStruct((Bp, ACTION_SPACE), out_dtype),
        grid=grid,
        in_specs=[
            pl.BlockSpec((tb, STATE_SPACE), lambda i: (i, 0)),        # x tile
            pl.BlockSpec((HIDDEN, STATE_SPACE), lambda i: (0, 0)),    # w1
            pl.BlockSpec((1, HIDDEN), lambda i: (0, 0)),              # b1
            pl.BlockSpec((HIDDEN, HIDDEN), lambda i: (0, 0)),         # w3
            pl.BlockSpec((1, HIDDEN), lambda i: (0, 0)),              # b3
            pl.BlockSpec((ACTION_SPACE, HIDDEN), lambda i: (0, 0)),   # w2
            pl.BlockSpec((1, ACTION_SPACE), lambda i: (0, 0)),        # b2
        ],
        out_specs=pl.BlockSpec((tb, ACTION_SPACE), lambda i: (i, 0)),
        compiler_params=pltpu.CompilerParams(
            dimension_semantics=("parallel",),
            # tb=4096 needs ~20-25 MiB (lane-padded x/out tiles + f32/bf16
            # intermediates, double-buffered): above v5e's 16 MiB scoped
            # default, comfortably under v7x's 64 MiB physical VMEM.
            vmem_limit_bytes=48 * 1024 * 1024,
        ),
        cost_estimate=cost,
    )(x, w1, b1, w3, b3, w2, b2)

    return out[:B] if Bp != B else out


def policy_reference(x, w1, b1, w3, b3, w2, b2):
    """Pure-JAX reference with the same bf16 matmul inputs / f32 accumulation."""
    xb = x.astype(jnp.bfloat16)
    h1 = jnp.maximum(
        lax.dot_general(xb, w1, _TRANS_B, preferred_element_type=jnp.float32)
        + b1, 0.0)
    h2 = jnp.maximum(
        lax.dot_general(h1.astype(jnp.bfloat16), w3, _TRANS_B,
                        preferred_element_type=jnp.float32) + b3, 0.0)
    logits = lax.dot_general(h2.astype(jnp.bfloat16), w2, _TRANS_B,
                             preferred_element_type=jnp.float32) + b2
    return jax.nn.softmax(logits, axis=1)


def init_params(key):
    """Mirrors PyTorch's default Linear init: U(-1/sqrt(fan_in), 1/sqrt(fan_in)).

    Weights stored in PyTorch layout (out, in) as bf16; biases as (1, out) f32.
    """
    def linear(key, fan_in, fan_out):
        kw, kb = jax.random.split(key)
        bound = 1.0 / jnp.sqrt(float(fan_in))
        w = jax.random.uniform(kw, (fan_out, fan_in), jnp.float32, -bound, bound)
        b = jax.random.uniform(kb, (1, fan_out), jnp.float32, -bound, bound)
        return w.astype(jnp.bfloat16), b

    k1, k3, k2 = jax.random.split(key, 3)
    w1, b1 = linear(k1, STATE_SPACE, HIDDEN)
    w3, b3 = linear(k3, HIDDEN, HIDDEN)
    w2, b2 = linear(k2, HIDDEN, ACTION_SPACE)
    return w1, b1, w3, b3, w2, b2


if __name__ == "__main__":
    key = jax.random.PRNGKey(0)
    kp, kx = jax.random.split(key)

    params = init_params(kp)
    batch = 8
    x = jax.random.normal(kx, (batch, STATE_SPACE), jnp.float32)

    probs = policy_forward(x, *params)
    probs = jax.block_until_ready(probs)

    # Sanity checks: shape, rows sum to ~1, and match the pure-JAX reference.
    assert probs.shape == (batch, ACTION_SPACE)
    assert jnp.allclose(jnp.sum(probs, axis=1), 1.0, atol=1e-2)
    ref = policy_reference(x, *params)
    assert jnp.allclose(probs, ref, atol=2e-2), float(jnp.max(jnp.abs(probs - ref)))

    print("KERNEL_OK")
</pallas_src>

<mosaic_0001>
module attributes {stable_mosaic.version = 11 : i64} {
  func.func @_policy_kernel(%arg0: i32, %arg1: memref<128x11xf32, #tpu.memory_space<vmem>>, %arg2: memref<128x11xbf16, #tpu.memory_space<vmem>>, %arg3: memref<1x128xf32, #tpu.memory_space<vmem>>, %arg4: memref<128x128xbf16, #tpu.memory_space<vmem>>, %arg5: memref<1x128xf32, #tpu.memory_space<vmem>>, %arg6: memref<4x128xbf16, #tpu.memory_space<vmem>>, %arg7: memref<1x4xf32, #tpu.memory_space<vmem>>, %arg8: memref<128x4xf32, #tpu.memory_space<vmem>>) attributes {dimension_semantics = [#tpu.dimension_semantics<parallel>], iteration_bounds = array<i64: 1>, scalar_prefetch = 0 : i64, scratch_operands = 0 : i64, tpu.core_type = #tpu.core_type<tc>, window_params = [{transform_indices = @transform_0, window_bounds = array<i64: 128, 11>}, {pipeline_mode = #tpu.pipeline_mode<synchronous>, transform_indices = @transform_1, window_bounds = array<i64: 128, 11>}, {pipeline_mode = #tpu.pipeline_mode<synchronous>, transform_indices = @transform_2, window_bounds = array<i64: 1, 128>}, {pipeline_mode = #tpu.pipeline_mode<synchronous>, transform_indices = @transform_3, window_bounds = array<i64: 128, 128>}, {pipeline_mode = #tpu.pipeline_mode<synchronous>, transform_indices = @transform_4, window_bounds = array<i64: 1, 128>}, {pipeline_mode = #tpu.pipeline_mode<synchronous>, transform_indices = @transform_5, window_bounds = array<i64: 4, 128>}, {pipeline_mode = #tpu.pipeline_mode<synchronous>, transform_indices = @transform_6, window_bounds = array<i64: 1, 4>}, {transform_indices = @transform_7, window_bounds = array<i64: 128, 4>}]} {
    %c0 = arith.constant 0 : index
    %c0_0 = arith.constant 0 : index
    %0 = vector.load %arg1[%c0, %c0_0] : memref<128x11xf32, #tpu.memory_space<vmem>>, vector<128x11xf32>
    %1 = arith.truncf %0 : vector<128x11xf32> to vector<128x11xbf16>
    %c0_1 = arith.constant 0 : index
    %c0_2 = arith.constant 0 : index
    %2 = vector.load %arg2[%c0_1, %c0_2] : memref<128x11xbf16, #tpu.memory_space<vmem>>, vector<128x11xbf16>
    %cst = arith.constant dense<0.000000e+00> : vector<128x128xf32>
    %3 = tpu.matmul %1, %2, %cst {dimension_numbers = #tpu.dot_dimension_numbers<[1], [1], [0], [0], [0, 0, 1, 0], [], []>} : vector<128x11xbf16>, vector<128x11xbf16>, vector<128x128xf32> -> vector<128x128xf32>
    %c0_3 = arith.constant 0 : index
    %c0_4 = arith.constant 0 : index
    %4 = vector.load %arg3[%c0_3, %c0_4] : memref<1x128xf32, #tpu.memory_space<vmem>>, vector<1x128xf32>
    %5 = vector.broadcast %4 : vector<1x128xf32> to vector<128x128xf32>
    %6 = arith.addf %3, %5 : vector<128x128xf32>
    %cst_5 = arith.constant 0.000000e+00 : f32
    %7 = vector.broadcast %cst_5 : f32 to vector<128x128xf32>
    %8 = arith.maximumf %6, %7 : vector<128x128xf32>
    %9 = arith.truncf %8 : vector<128x128xf32> to vector<128x128xbf16>
    %c0_6 = arith.constant 0 : index
    %c0_7 = arith.constant 0 : index
    %10 = vector.load %arg4[%c0_6, %c0_7] : memref<128x128xbf16, #tpu.memory_space<vmem>>, vector<128x128xbf16>
    %cst_8 = arith.constant dense<0.000000e+00> : vector<128x128xf32>
    %11 = tpu.matmul %9, %10, %cst_8 {dimension_numbers = #tpu.dot_dimension_numbers<[1], [1], [0], [0], [0, 0, 1, 0], [], []>} : vector<128x128xbf16>, vector<128x128xbf16>, vector<128x128xf32> -> vector<128x128xf32>
    %c0_9 = arith.constant 0 : index
    %c0_10 = arith.constant 0 : index
    %12 = vector.load %arg5[%c0_9, %c0_10] : memref<1x128xf32, #tpu.memory_space<vmem>>, vector<1x128xf32>
    %13 = vector.broadcast %12 : vector<1x128xf32> to vector<128x128xf32>
    %14 = arith.addf %11, %13 : vector<128x128xf32>
    %cst_11 = arith.constant 0.000000e+00 : f32
    %15 = vector.broadcast %cst_11 : f32 to vector<128x128xf32>
    %16 = arith.maximumf %14, %15 : vector<128x128xf32>
    %17 = arith.truncf %16 : vector<128x128xf32> to vector<128x128xbf16>
    %c0_12 = arith.constant 0 : index
    %c0_13 = arith.constant 0 : index
    %18 = vector.load %arg6[%c0_12, %c0_13] : memref<4x128xbf16, #tpu.memory_space<vmem>>, vector<4x128xbf16>
    %cst_14 = arith.constant dense<0.000000e+00> : vector<128x4xf32>
    %19 = tpu.matmul %17, %18, %cst_14 {dimension_numbers = #tpu.dot_dimension_numbers<[1], [1], [0], [0], [0, 0, 1, 0], [], []>} : vector<128x128xbf16>, vector<4x128xbf16>, vector<128x4xf32> -> vector<128x4xf32>
    %c0_15 = arith.constant 0 : index
    %c0_16 = arith.constant 0 : index
    %20 = vector.load %arg7[%c0_15, %c0_16] : memref<1x4xf32, #tpu.memory_space<vmem>>, vector<1x4xf32>
    %21 = vector.broadcast %20 : vector<1x4xf32> to vector<128x4xf32>
    %22 = arith.addf %19, %21 : vector<128x4xf32>
    %cst_17 = arith.constant dense<0xFF800000> : vector<128xf32>
    %23 = vector.multi_reduction <maximumf>, %22, %cst_17 [1] : vector<128x4xf32> to vector<128xf32>
    %24 = vector.shape_cast %23 : vector<128xf32> to vector<128x1xf32>
    %25 = vector.broadcast %24 : vector<128x1xf32> to vector<128x4xf32>
    %26 = arith.subf %22, %25 : vector<128x4xf32>
    %27 = math.exp %26 : vector<128x4xf32>
    %cst_18 = arith.constant dense<0.000000e+00> : vector<128xf32>
    %28 = vector.multi_reduction <add>, %27, %cst_18 [1] : vector<128x4xf32> to vector<128xf32>
    %29 = vector.shape_cast %28 : vector<128xf32> to vector<128x1xf32>
    %30 = tpu.reciprocal %29 {approx = true} : vector<128x1xf32> -> vector<128x1xf32>
    %31 = vector.broadcast %30 : vector<128x1xf32> to vector<128x4xf32>
    %32 = arith.mulf %27, %31 : vector<128x4xf32>
    %c0_19 = arith.constant 0 : index
    %c0_20 = arith.constant 0 : index
    %33 = vector.load %arg8[%c0_19, %c0_20] : memref<128x4xf32, #tpu.memory_space<vmem>>, vector<128x4xf32>
    tpu.vector_store %arg8[%c0_19, %c0_20], %32 {strides = array<i32>} : memref<128x4xf32, #tpu.memory_space<vmem>>, vector<128x4xf32>,
    return
  }
  func.func @transform_0(%arg0: i32) -> (i32, i32) {
    %c0_i32 = arith.constant 0 : i32
    %c0_i32_0 = arith.constant 0 : i32
    return %arg0, %c0_i32 : i32, i32
  }
  func.func @transform_1(%arg0: i32) -> (i32, i32) {
    %c0_i32 = arith.constant 0 : i32
    %c0_i32_0 = arith.constant 0 : i32
    %c0_i32_1 = arith.constant 0 : i32
    return %c0_i32, %c0_i32_0 : i32, i32
  }
  func.func @transform_2(%arg0: i32) -> (i32, i32) {
    %c0_i32 = arith.constant 0 : i32
    %c0_i32_0 = arith.constant 0 : i32
    %c0_i32_1 = arith.constant 0 : i32
    return %c0_i32, %c0_i32_0 : i32, i32
  }
  func.func @transform_3(%arg0: i32) -> (i32, i32) {
    %c0_i32 = arith.constant 0 : i32
    %c0_i32_0 = arith.constant 0 : i32
    %c0_i32_1 = arith.constant 0 : i32
    return %c0_i32, %c0_i32_0 : i32, i32
  }
  func.func @transform_4(%arg0: i32) -> (i32, i32) {
    %c0_i32 = arith.constant 0 : i32
    %c0_i32_0 = arith.constant 0 : i32
    %c0_i32_1 = arith.constant 0 : i32
    return %c0_i32, %c0_i32_0 : i32, i32
  }
  func.func @transform_5(%arg0: i32) -> (i32, i32) {
    %c0_i32 = arith.constant 0 : i32
    %c0_i32_0 = arith.constant 0 : i32
    %c0_i32_1 = arith.constant 0 : i32
    return %c0_i32, %c0_i32_0 : i32, i32
  }
  func.func @transform_6(%arg0: i32) -> (i32, i32) {
    %c0_i32 = arith.constant 0 : i32
    %c0_i32_0 = arith.constant 0 : i32
    %c0_i32_1 = arith.constant 0 : i32
    return %c0_i32, %c0_i32_0 : i32, i32
  }
  func.func @transform_7(%arg0: i32) -> (i32, i32) {
    %c0_i32 = arith.constant 0 : i32
    %c0_i32_0 = arith.constant 0 : i32
    return %arg0, %c0_i32 : i32, i32
  }
}

</mosaic_0001>

<bundles_post_ra>
// kernel: policy_forward.1
= control target key start
LH: loop header
LB: loop body
LE: loop exit
PB: predicated region body
PF: predicated region fallthrough
CT: control target
= control target key end

     0   :  { %vm114_vm0 = vcmask 89088   ;;  %vm581_vm1 = vcmask 31744   ;;  %s1414_s1 = inlined_call_operand.vmem [shape: bf16[128,11], index: 1, kind: input, shape index: {}]   ;;  %s1415_s0 = inlined_call_operand.vmem [shape: f32[128,11], index: 0, kind: input, shape index: {}]   ;;  %s1416_s3 = inlined_call_operand.vmem [shape: bf16[128,128], index: 3, kind: input, shape index: {}]   ;;  %s1417_s5 = inlined_call_operand.vmem [shape: bf16[4,128], index: 5, kind: input, shape index: {}]   ;;  %s1418_s2 = inlined_call_operand.vmem [shape: f32[1,128], index: 2, kind: input, shape index: {}]   ;;  %s1419_s4 = inlined_call_operand.vmem [shape: f32[1,128], index: 4, kind: input, shape index: {}]   ;;  %s1420_s6 = inlined_call_operand.vmem [shape: f32[1,4], index: 6, kind: input, shape index: {}]   ;;  %s1421_s7 = inlined_call_operand.vmem [shape: f32[128,4], index: 7, kind: output, shape index: {}]  }
   0x1   :  { %v938_v0 = vld [vmem:[%s1414_s1] sm:$0xff]   ;;  %v939_v1 = vld [vmem:[%s1414_s1 + $0x8] sm:$0xff]   ;;  %v940_v4 = vld [vmem:[%s1414_s1 + $0x10] sm:$0xff]  }
   0x2   :  { %930 = vmatprep.subr.msk.bf16.mxu0 %vm114_vm0, %v938_v0  ;;  %v140_v2 = vsel %vm114_vm0, %v938_v0, 0  ;;  %v143_v3 = vsel %vm114_vm0, %v939_v1, 0  ;;  %v27_v5 = vld [vmem:[%s1415_s0] sm:$0xff]  ;;  %v28_v6 = vld [vmem:[%s1415_s0 + $0x8] sm:$0xff]  ;;  %v146_v10 = vsel %vm114_vm0, %v940_v4, 0  ;;  %v941_v11 = vld [vmem:[%s1414_s1 + $0x18] sm:$0xff]  }
   0x3   :  { %847 = vmatpush3.bf16.xpose.msra.mxu0 %v140_v2  ;;  %v43_v7 = vpack.c.bf16 %v28_v6, %v27_v5  ;;  %v946_v8 = vld [vmem:[%s1416_s3] sm:$0xff]   ;;  %v947_v9 = vld [vmem:[%s1416_s3 + $0x8] sm:$0xff]   ;;  %v948_v12 = vld [vmem:[%s1416_s3 + $0x10] sm:$0xff]   ;;  %v149_v13 = vsel %vm114_vm0, %v941_v11, 0 }
   0x4   :  { %931 = vmatprep.subr.msk.bf16.mxu0 %vm114_vm0, %v939_v1  ;;  %878 = vmatprep.subr.bf16.mxu1 %v946_v8  ;;  %v942_v14 = vld [vmem:[%s1414_s1 + $0x20] sm:$0xff]   ;;  %v949_v15 = vld [vmem:[%s1416_s3 + $0x18] sm:$0xff]   ;;  %v943_v17 = vld [vmem:[%s1414_s1 + $0x28] sm:$0xff]  }
   0x5   :  { %862 = vmatprep.mubr.msk.bf16.mxu0 %vm114_vm0, %v43_v7  ;;  %879 = vmatpush3.bf16.xpose.msra.mxu1 %v946_v8  ;;  %v152_v16 = vsel %vm114_vm0, %v942_v14, 0  ;;  %v950_v18 = vld [vmem:[%s1416_s3 + $0x20] sm:$0xff]   ;;  %v155_v19 = vsel %vm114_vm0, %v943_v17, 0  ;;  %v944_v20 = vld [vmem:[%s1414_s1 + $0x30] sm:$0xff]   ;;  %v951_v21 = vld [vmem:[%s1416_s3 + $0x28] sm:$0xff]  }
   0x6   :  { %880 = vmatprep.subr.bf16.mxu1 %v947_v9  ;;  %v158_v22 = vsel %vm114_vm0, %v944_v20, 0  ;;  %v945_v23 = vld [vmem:[%s1414_s1 + $0x38] sm:$0xff]   ;;  %v952_v24 = vld [vmem:[%s1416_s3 + $0x30] sm:$0xff]   ;;  %v31_v28 = vld [vmem:[%s1415_s0 + $0x20] sm:$0xff] }
   0x7   :  { %v161_v25 = vsel %vm114_vm0, %v945_v23, 0  ;;  %v29_v26 = vld [vmem:[%s1415_s0 + $0x10] sm:$0xff]  ;;  %v30_v27 = vld [vmem:[%s1415_s0 + $0x18] sm:$0xff]  ;;  %v32_v29 = vld [vmem:[%s1415_s0 + $0x28] sm:$0xff] }
   0x8   :  { %v44_v30 = vpack.c.bf16 %v30_v27, %v29_v26  ;;  %v45_v31 = vpack.c.bf16 %v32_v29, %v31_v28  ;;  %v33_v32 = vld [vmem:[%s1415_s0 + $0x30] sm:$0xff]  ;;  %v34_v33 = vld [vmem:[%s1415_s0 + $0x38] sm:$0xff]  ;;  %v35_v34 = vld [vmem:[%s1415_s0 + $0x40] sm:$0xff] }
   0x9   :  { %v36_v35 = vld [vmem:[%s1415_s0 + $0x48] sm:$0xff]  ;;  %v46_v36 = vpack.c.bf16 %v34_v33, %v33_v32  ;;  %v37_v38 = vld [vmem:[%s1415_s0 + $0x50] sm:$0xff]  ;;  %v38_v39 = vld [vmem:[%s1415_s0 + $0x58] sm:$0xff] }
   0xa   :  { %v47_v37 = vpack.c.bf16 %v36_v35, %v35_v34  ;;  %v39_v40 = vld [vmem:[%s1415_s0 + $0x60] sm:$0xff]  ;;  %v40_v41 = vld [vmem:[%s1415_s0 + $0x68] sm:$0xff]  ;;  %v48_v42 = vpack.c.bf16 %v38_v39, %v37_v38  ;;  %v41_v44 = vld [vmem:[%s1415_s0 + $0x70] sm:$0xff] }
   0xb   :  { %849 = vmatpush3.bf16.xpose.msra.mxu0 %v143_v3  ;;  %v49_v43 = vpack.c.bf16 %v40_v41, %v39_v40  ;;  %v42_v45 = vld [vmem:[%s1415_s0 + $0x78] sm:$0xff]  ;;  %v476_v48 = vld [vmem:[%s1417_s5] sm:$0x3] }
   0xc   :  { %932 = vmatprep.subr.msk.bf16.mxu0 %vm114_vm0, %v940_v4  ;;  %v50_v46 = vpack.c.bf16 %v42_v45, %v41_v44  ;;  %v953_v47 = vld [vmem:[%s1416_s3 + $0x38] sm:$0xff]   ;;  %v778_v49 = vld [vmem:[%s1418_s2] ss:$0 sm:$0xff] }
   0xd   :  { %881 = vmatpush3.bf16.xpose.msra.mxu1 %v947_v9 }
   0xe   :  { %882 = vmatprep.subr.bf16.mxu1 %v948_v12 }
  0x13   :  { %851 = vmatpush3.bf16.xpose.msra.mxu0 %v146_v10 }
  0x14   :  { %933 = vmatprep.subr.msk.bf16.mxu0 %vm114_vm0, %v941_v11 }
  0x15   :  { %883 = vmatpush3.bf16.xpose.msra.mxu1 %v948_v12 }
  0x16   :  { %884 = vmatprep.subr.bf16.mxu1 %v949_v15 }
  0x1b   :  { %853 = vmatpush3.bf16.xpose.msra.mxu0 %v149_v13 }
  0x1c   :  { %934 = vmatprep.subr.msk.bf16.mxu0 %vm114_vm0, %v942_v14 }
  0x1d   :  { %885 = vmatpush3.bf16.xpose.msra.mxu1 %v949_v15 }
  0x1e   :  { %886 = vmatprep.subr.bf16.mxu1 %v950_v18 }
  0x23   :  { %855 = vmatpush3.bf16.xpose.msra.mxu0 %v152_v16 }
  0x24   :  { %935 = vmatprep.subr.msk.bf16.mxu0 %vm114_vm0, %v943_v17 }
  0x25   :  { %887 = vmatpush3.bf16.xpose.msra.mxu1 %v950_v18 }
  0x26   :  { %888 = vmatprep.subr.bf16.mxu1 %v951_v21 }
  0x2b   :  { %857 = vmatpush3.bf16.xpose.msra.mxu0 %v155_v19 }
  0x2c   :  { %936 = vmatprep.subr.msk.bf16.mxu0 %vm114_vm0, %v944_v20 }
  0x2d   :  { %889 = vmatpush3.bf16.xpose.msra.mxu1 %v951_v21 }
  0x2e   :  { %890 = vmatprep.subr.bf16.mxu1 %v952_v24 }
  0x33   :  { %859 = vmatpush3.bf16.xpose.msra.mxu0 %v158_v22 }
  0x34   :  { %937 = vmatprep.subr.msk.bf16.mxu0 %vm114_vm0, %v945_v23 }
  0x35   :  { %891 = vmatpush3.bf16.xpose.msra.mxu1 %v952_v24 }
  0x36   :  { %892 = vmatprep.subr.bf16.mxu1 %v953_v47 }
  0x3b   :  { %861 = vmatpush3.bf16.xpose.msra.mxu0 %v161_v25 }
  0x3c   :  { %910 = vmatprep.subr.bf16.mxu0 %v476_v48 }
  0x3d   :  { %893 = vmatpush3.bf16.xpose.msra.mxu1 %v953_v47 }
  0x3e   :  { %928 = vmatprep.subr.bf16.mxu1 %v476_v48 }
  0x42   :  { %863 = vmatmul.mubr.msk.bf16.vlgmr.msra.gmra.mrb[0].mxu0 %vm114_vm0, %v44_v30 }
  0x43   :  { %866 = vmatprep.mubr.msk.bf16.mxu0 %vm114_vm0, %v45_v31  ;;  %911 = vmatpush3.bf16.xpose.msra.mxu0 %v476_v48 }
  0x4a   :  { %867 = vmatmul.mubr.msk.bf16.gmra.mrb[4].mxu0 %vm114_vm0, %v46_v36 }
  0x4b   :  { %870 = vmatprep.mubr.msk.bf16.mxu0 %vm114_vm0, %v47_v37 }
  0x52   :  { %871 = vmatmul.mubr.msk.bf16.gmra.mrb[8].mxu0 %vm114_vm0, %v48_v42  ;;  %v795_v42 = vld [vmem:[%s1419_s4] ss:$0 sm:$0xff] }
  0x53   :  { %874 = vmatprep.mubr.msk.bf16.mxu0 %vm114_vm0, %v49_v43 }
  0x5a   :  { %875 = vmatmul.mubr.msk.bf16.gmra.mrb[12].mxu0 %vm114_vm0, %v50_v46 }
 0x115   :  { %v864_v50 = vpop.f32.mrb[0].mxu0 }
 0x116   :  { %v206_v51 = vadd.f32 %v864_v50, %v778_v49  ;;  %v197_v52 = vpop.f32.mrb[1].mxu0 }
 0x117   :  { %v198_v53 = vadd.f32 %v778_v49, %v197_v52  ;;  %v865_v54 = vpop.f32.mrb[2].mxu0 }
 0x118   :  { %v209_v55 = vadd.f32 %v865_v54, %v778_v49  ;;  %v200_v56 = vpop.f32.mrb[3].mxu0  ;;  %v262_v58 = vmax.f32 %v206_v51, 0.0 }
 0x119   :  { %v201_v57 = vadd.f32 %v778_v49, %v200_v56  ;;  %v260_v60 = vmax.f32 %v198_v53, 0.0 }
 0x11a   :  { %v263_v59 = vmax.f32 %v209_v55, 0.0 }
 0x11b   :  { %v261_v61 = vmax.f32 %v201_v57, 0.0 }
 0x11c   :  { %v277_v62 = vpack.c.bf16 %v263_v59, %v262_v58 }
 0x11d   :  { %v868_v63 = vpop.f32.mrb[4].mxu0  ;;  %v276_v0 = vpack.c.bf16 %v261_v61, %v260_v60 }
 0x11e   :  { %v222_v1 = vadd.f32 %v868_v63, %v778_v49  ;;  %v213_v2 = vpop.f32.mrb[5].mxu0 }
 0x11f   :  { %v214_v3 = vadd.f32 %v778_v49, %v213_v2  ;;  %v869_v4 = vpop.f32.mrb[6].mxu0  ;;  %894 = vmatprep.mubr.bf16.mxu1 %v276_v0 }
 0x120   :  { %v266_v5 = vmax.f32 %v222_v1, 0.0  ;;  %v225_v6 = vadd.f32 %v869_v4, %v778_v49  ;;  %v216_v7 = vpop.f32.mrb[7].mxu0  ;;  %895 = vmatmul.mubr.bf16.vlgmr.msra.gmra.mrb[0].mxu1 %v277_v62 }
 0x121   :  { %v217_v8 = vadd.f32 %v778_v49, %v216_v7  ;;  %929 = vmatpush3.bf16.xpose.msra.mxu1 %v476_v48  ;;  %v264_v10 = vmax.f32 %v214_v3, 0.0 }
 0x122   :  { %v267_v9 = vmax.f32 %v225_v6, 0.0 }
 0x123   :  { %v265_v11 = vmax.f32 %v217_v8, 0.0 }
 0x124   :  { %v279_v12 = vpack.c.bf16 %v267_v9, %v266_v5 }
 0x125   :  { %v278_v13 = vpack.c.bf16 %v265_v11, %v264_v10  ;;  %v872_v14 = vpop.f32.mrb[8].mxu0 }
 0x126   :  { %v238_v15 = vadd.f32 %v872_v14, %v778_v49  ;;  %v229_v16 = vpop.f32.mrb[9].mxu0 }
 0x127   :  { %v230_v17 = vadd.f32 %v778_v49, %v229_v16  ;;  %v873_v18 = vpop.f32.mrb[10].mxu0  ;;  %898 = vmatprep.mubr.bf16.mxu1 %v278_v13 }
 0x128   :  { %v270_v19 = vmax.f32 %v238_v15, 0.0  ;;  %v241_v20 = vadd.f32 %v873_v18, %v778_v49  ;;  %v232_v21 = vpop.f32.mrb[11].mxu0  ;;  %899 = vmatmul.mubr.bf16.gmra.mrb[4].mxu1 %v279_v12 }
 0x129   :  { %v233_v22 = vadd.f32 %v778_v49, %v232_v21  ;;  %v268_v24 = vmax.f32 %v230_v17, 0.0 }
 0x12a   :  { %v271_v23 = vmax.f32 %v241_v20, 0.0 }
 0x12b   :  { %v269_v25 = vmax.f32 %v233_v22, 0.0 }
 0x12c   :  { %v281_v26 = vpack.c.bf16 %v271_v23, %v270_v19 }
 0x12d   :  { %v280_v27 = vpack.c.bf16 %v269_v25, %v268_v24  ;;  %v876_v28 = vpop.f32.mrb[12].mxu0 }
 0x12e   :  { %v254_v29 = vadd.f32 %v876_v28, %v778_v49  ;;  %v245_v30 = vpop.f32.mrb[13].mxu0 }
 0x12f   :  { %v246_v31 = vadd.f32 %v778_v49, %v245_v30  ;;  %v877_v32 = vpop.f32.mrb[14].mxu0  ;;  %902 = vmatprep.mubr.bf16.mxu1 %v280_v27 }
 0x130   :  { %v274_v33 = vmax.f32 %v254_v29, 0.0  ;;  %v257_v34 = vadd.f32 %v877_v32, %v778_v49  ;;  %v248_v35 = vpop.f32.mrb[15].mxu0  ;;  %903 = vmatmul.mubr.bf16.gmra.mrb[8].mxu1 %v281_v26 }
 0x131   :  { %v249_v36 = vadd.f32 %v778_v49, %v248_v35  ;;  %v272_v38 = vmax.f32 %v246_v31, 0.0  ;;  %v804_v35 = vld [vmem:[%s1420_s6] ss:$0 sm:$0xff] }
 0x132   :  { %v275_v37 = vmax.f32 %v257_v34, 0.0 }
 0x133   :  { %v273_v39 = vmax.f32 %v249_v36, 0.0 }
 0x134   :  { %v283_v40 = vpack.c.bf16 %v275_v37, %v274_v33 }
 0x135   :  { %v282_v41 = vpack.c.bf16 %v273_v39, %v272_v38 }
 0x137   :  { %906 = vmatprep.mubr.bf16.mxu1 %v282_v41 }
 0x138   :  { %907 = vmatmul.mubr.bf16.gmra.mrb[12].mxu1 %v283_v40 }
 0x1f3   :  { %v896_v43 = vpop.f32.mrb[0].mxu1 }
 0x1f4   :  { %v398_v44 = vadd.f32 %v896_v43, %v795_v42  ;;  %v389_v45 = vpop.f32.mrb[1].mxu1 }
 0x1f5   :  { %v390_v46 = vadd.f32 %v795_v42, %v389_v45  ;;  %v897_v47 = vpop.f32.mrb[2].mxu1 }
 0x1f6   :  { %v401_v48 = vadd.f32 %v897_v47, %v795_v42  ;;  %v392_v50 = vpop.f32.mrb[3].mxu1  ;;  %v454_v49 = vmax.f32 %v398_v44, 0.0 }
 0x1f7   :  { %v393_v51 = vadd.f32 %v795_v42, %v392_v50  ;;  %v452_v53 = vmax.f32 %v390_v46, 0.0 }
 0x1f8   :  { %v455_v52 = vmax.f32 %v401_v48, 0.0 }
 0x1f9   :  { %v453_v54 = vmax.f32 %v393_v51, 0.0 }
 0x1fa   :  { %v469_v55 = vpack.c.bf16 %v455_v52, %v454_v49 }
 0x1fb   :  { %v468_v56 = vpack.c.bf16 %v453_v54, %v452_v53  ;;  %v900_v57 = vpop.f32.mrb[4].mxu1 }
 0x1fc   :  { %v414_v58 = vadd.f32 %v900_v57, %v795_v42  ;;  %v405_v59 = vpop.f32.mrb[5].mxu1 }
 0x1fd   :  { %v406_v60 = vadd.f32 %v795_v42, %v405_v59  ;;  %v901_v61 = vpop.f32.mrb[6].mxu1  ;;  %912 = vmatprep.mubr.bf16.mxu0 %v468_v56 }
 0x1fe   :  { %v417_v62 = vadd.f32 %v901_v61, %v795_v42  ;;  %v408_v63 = vpop.f32.mrb[7].mxu1  ;;  %913 = vmatmul.mubr.bf16.vlgmr.msra.gmra.mrb[16].mxu0 %v469_v55  ;;  %v458_v1 = vmax.f32 %v414_v58, 0.0 }
 0x1ff   :  { %v409_v0 = vadd.f32 %v795_v42, %v408_v63  ;;  %v456_v3 = vmax.f32 %v406_v60, 0.0 }
 0x200   :  { %v459_v2 = vmax.f32 %v417_v62, 0.0 }
 0x201   :  { %v457_v4 = vmax.f32 %v409_v0, 0.0 }
 0x202   :  { %v471_v5 = vpack.c.bf16 %v459_v2, %v458_v1 }
 0x203   :  { %v470_v6 = vpack.c.bf16 %v457_v4, %v456_v3  ;;  %v904_v7 = vpop.f32.mrb[8].mxu1 }
 0x204   :  { %v430_v8 = vadd.f32 %v904_v7, %v795_v42  ;;  %v421_v9 = vpop.f32.mrb[9].mxu1 }
 0x205   :  { %v422_v10 = vadd.f32 %v795_v42, %v421_v9  ;;  %v905_v11 = vpop.f32.mrb[10].mxu1  ;;  %916 = vmatprep.mubr.bf16.mxu0 %v470_v6 }
 0x206   :  { %v433_v12 = vadd.f32 %v905_v11, %v795_v42  ;;  %v424_v13 = vpop.f32.mrb[11].mxu1  ;;  %917 = vmatmul.mubr.bf16.gmra.mrb[20].mxu0 %v471_v5  ;;  %v462_v15 = vmax.f32 %v430_v8, 0.0 }
 0x207   :  { %v425_v14 = vadd.f32 %v795_v42, %v424_v13  ;;  %v460_v17 = vmax.f32 %v422_v10, 0.0 }
 0x208   :  { %v463_v16 = vmax.f32 %v433_v12, 0.0 }
 0x209   :  { %v461_v18 = vmax.f32 %v425_v14, 0.0 }
 0x20a   :  { %v473_v19 = vpack.c.bf16 %v463_v16, %v462_v15 }
 0x20b   :  { %v472_v20 = vpack.c.bf16 %v461_v18, %v460_v17  ;;  %v908_v21 = vpop.f32.mrb[12].mxu1 }
 0x20c   :  { %v446_v22 = vadd.f32 %v908_v21, %v795_v42  ;;  %v437_v23 = vpop.f32.mrb[13].mxu1 }
 0x20d   :  { %v438_v24 = vadd.f32 %v795_v42, %v437_v23  ;;  %v909_v25 = vpop.f32.mrb[14].mxu1  ;;  %920 = vmatprep.mubr.bf16.mxu1 %v472_v20 }
 0x20e   :  { %v449_v26 = vadd.f32 %v909_v25, %v795_v42  ;;  %v440_v27 = vpop.f32.mrb[15].mxu1  ;;  %921 = vmatmul.mubr.bf16.vlgmr.msra.gmra.mrb[16].mxu1 %v473_v19  ;;  %v466_v29 = vmax.f32 %v446_v22, 0.0 }
 0x20f   :  { %v441_v28 = vadd.f32 %v795_v42, %v440_v27  ;;  %v464_v31 = vmax.f32 %v438_v24, 0.0 }
 0x210   :  { %v467_v30 = vmax.f32 %v449_v26, 0.0 }
 0x211   :  { %v465_v32 = vmax.f32 %v441_v28, 0.0 }
 0x212   :  { %v475_v33 = vpack.c.bf16 %v467_v30, %v466_v29 }
 0x213   :  { %v474_v34 = vpack.c.bf16 %v465_v32, %v464_v31 }
 0x215   :  { %924 = vmatprep.mubr.bf16.mxu1 %v474_v34 }
 0x216   :  { %925 = vmatmul.mubr.bf16.gmra.mrb[20].mxu1 %v475_v33 }
 0x2d1   :  { %v914_v36 = vpop.f32.mrb[16].mxu0 }
 0x2d2   :  { %v1190_v37 = vadd.f32 %v914_v36, %v804_v35  ;;  %v518_v38 = vpop.f32.mrb[17].mxu0 }
 0x2d3   :  { %v1192_v39 = vadd.f32 %v804_v35, %v518_v38  ;;  %v915_v40 = vpop.f32.mrb[18].mxu0 }
 0x2d4   :  { %v1194_v41 = vadd.f32 %v915_v40, %v804_v35  ;;  %v521_v42 = vpop.f32.mrb[19].mxu0  ;;  %v588_v43 = vsel %vm581_vm1, %v1190_v37, -inf }
 0x2d5   :  { %v1198_v44 = vadd.f32 %v804_v35, %v521_v42  ;;  %589 = vmax.xlane.f32.xlu1 %v588_v43  ;;  %v582_v45 = vsel %vm581_vm1, %v1192_v39, -inf }
 0x2d6   :  { %583 = vmax.xlane.f32.xlu0 %v582_v45  ;;  %v591_v46 = vsel %vm581_vm1, %v1194_v41, -inf }
 0x2d7   :  { %v585_v48 = vsel %vm581_vm1, %v1198_v44, -inf }
 0x2d9   :  { %592 = vmax.xlane.f32.xlu1 %v591_v46  ;;  %v918_v47 = vpop.f32.mrb[20].mxu0 }
 0x2da   :  { %v1206_v50 = vadd.f32 %v918_v47, %v804_v35  ;;  %v534_v51 = vpop.f32.mrb[21].mxu0  ;;  %586 = vmax.xlane.f32.xlu0 %v585_v48 }
 0x2db   :  { %v919_v49 = vpop.f32.mrb[22].mxu0  ;;  %v1212_v55 = vadd.f32 %v804_v35, %v534_v51 }
 0x2dc   :  { %v1208_v52 = vadd.f32 %v919_v49, %v804_v35  ;;  %v537_v53 = vpop.f32.mrb[23].mxu0  ;;  %v600_v54 = vsel %vm581_vm1, %v1206_v50, -inf }
 0x2dd   :  { %v1214_v56 = vadd.f32 %v804_v35, %v537_v53  ;;  %v594_v59 = vsel %vm581_vm1, %v1212_v55, -inf }
 0x2de   :  { %601 = vmax.xlane.f32.xlu0 %v600_v54  ;;  %v603_v57 = vsel %vm581_vm1, %v1208_v52, -inf }
 0x2df   :  { %604 = vmax.xlane.f32.xlu1 %v603_v57  ;;  %v597_v62 = vsel %vm581_vm1, %v1214_v56, -inf }
 0x2e1   :  { %v922_v58 = vpop.f32.mrb[16].mxu1 }
 0x2e2   :  { %v1220_v60 = vadd.f32 %v922_v58, %v804_v35  ;;  %v550_v61 = vpop.f32.mrb[17].mxu1  ;;  %595 = vmax.xlane.f32.xlu0 %v594_v59 }
 0x2e3   :  { %v923_v63 = vpop.f32.mrb[18].mxu1  ;;  %598 = vmax.xlane.f32.xlu1 %v597_v62  ;;  %v1228_v3 = vadd.f32 %v804_v35, %v550_v61 }
 0x2e4   :  { %v1224_v0 = vadd.f32 %v923_v63, %v804_v35  ;;  %v553_v1 = vpop.f32.mrb[19].mxu1  ;;  %v612_v2 = vsel %vm581_vm1, %v1220_v60, -inf }
 0x2e5   :  { %v1230_v4 = vadd.f32 %v804_v35, %v553_v1  ;;  %v606_v7 = vsel %vm581_vm1, %v1228_v3, -inf }
 0x2e6   :  { %613 = vmax.xlane.f32.xlu0 %v612_v2  ;;  %v615_v5 = vsel %vm581_vm1, %v1224_v0, -inf }
 0x2e7   :  { %616 = vmax.xlane.f32.xlu1 %v615_v5  ;;  %v609_v9 = vsel %vm581_vm1, %v1230_v4, -inf }
 0x2e9   :  { %v926_v6 = vpop.f32.mrb[20].mxu1 }
 0x2ea   :  { %v566_v8 = vpop.f32.mrb[21].mxu1  ;;  %607 = vmax.xlane.f32.xlu0 %v606_v7  ;;  %v1240_v13 = vadd.f32 %v926_v6, %v804_v35 }
 0x2eb   :  { %v1238_v10 = vadd.f32 %v804_v35, %v566_v8  ;;  %v927_v11 = vpop.f32.mrb[22].mxu1  ;;  %610 = vmax.xlane.f32.xlu1 %v609_v9 }
 0x2ec   :  { %v569_v12 = vpop.f32.mrb[23].mxu1  ;;  %v1246_v16 = vadd.f32 %v927_v11, %v804_v35  ;;  %v624_v18 = vsel %vm581_vm1, %v1240_v13, -inf }
 0x2ed   :  { %v1242_v14 = vadd.f32 %v804_v35, %v569_v12  ;;  %v618_v15 = vsel %vm581_vm1, %v1238_v10, -inf }
 0x2ee   :  { %619 = vmax.xlane.f32.xlu0 %v618_v15  ;;  %v627_v19 = vsel %vm581_vm1, %v1246_v16, -inf }
 0x2ef   :  { %v621_v17 = vsel %vm581_vm1, %v1242_v14, -inf }
 0x2f0   :  { %622 = vmax.xlane.f32.xlu1 %v621_v17 }
 0x2f2   :  { %625 = vmax.xlane.f32.xlu0 %v624_v18 }
 0x2f4   :  { %628 = vmax.xlane.f32.xlu1 %v627_v19 }
 0x362   :  { %v590_v20 = vpop.xlane.xlu1 %589 }
 0x363   :  { %v632_v21 = vsub.f32 %v1190_v37, %v590_v20  ;;  %v584_v22 = vpop.xlane.xlu0 %583 }
 0x364   :  { %v630_v23 = vsub.f32 %v1192_v39, %v584_v22 }
 0x365   :  { %v650_v24 = vmul.f32 1.442695, %v632_v21 }
 0x366   :  { %v646_v25 = vmul.f32 1.442695, %v630_v23  ;;  %v593_v26 = vpop.xlane.xlu1 %592 }
 0x367   :  { %954 = vpow2.f32 %v650_v24  ;;  %v633_v27 = vsub.f32 %v1194_v41, %v593_v26  ;;  %v587_v28 = vpop.xlane.xlu0 %586 }
 0x368   :  { %v631_v29 = vsub.f32 %v1198_v44, %v587_v28  ;;  %956 = vpow2.f32 %v646_v25 }
 0x369   :  { %v652_v30 = vmul.f32 1.442695, %v633_v27 }
 0x36a   :  { %v648_v31 = vmul.f32 1.442695, %v631_v29 }
 0x36b   :  { %958 = vpow2.f32 %v652_v30  ;;  %v602_v32 = vpop.xlane.xlu0 %601 }
 0x36c   :  { %v636_v33 = vsub.f32 %v1206_v50, %v602_v32  ;;  %v605_v34 = vpop.xlane.xlu1 %604  ;;  %960 = vpow2.f32 %v648_v31 }
 0x36d   :  { %v637_v35 = vsub.f32 %v1208_v52, %v605_v34 }
 0x36e   :  { %v658_v36 = vmul.f32 1.442695, %v636_v33 }
 0x36f   :  { %v660_v37 = vmul.f32 1.442695, %v637_v35  ;;  %v596_v38 = vpop.xlane.xlu0 %595 }
 0x370   :  { %962 = vpow2.f32 %v658_v36  ;;  %v634_v39 = vsub.f32 %v1212_v55, %v596_v38  ;;  %v599_v40 = vpop.xlane.xlu1 %598 }
 0x371   :  { %v1261_v41 = vpop.eup %954  ;;  %964 = vpow2.f32 %v660_v37  ;;  %v635_v42 = vsub.f32 %v1214_v56, %v599_v40 }
 0x372   :  { %v654_v43 = vmul.f32 1.442695, %v634_v39  ;;  %v684_v44 = vsel %vm581_vm1, %v1261_v41, 0.0  ;;  %v1266_v45 = vpop.eup %956 }
 0x373   :  { %v656_v46 = vmul.f32 1.442695, %v635_v42  ;;  %685 = vadd.xlane.f32.xlu0 %v684_v44  ;;  %v614_v47 = vpop.xlane.xlu0 %613  ;;  %v678_v54 = vsel %vm581_vm1, %v1266_v45, 0.0 }
 0x374   :  { %966 = vpow2.f32 %v654_v43  ;;  %v640_v48 = vsub.f32 %v1220_v60, %v614_v47  ;;  %v617_v50 = vpop.xlane.xlu1 %616 }
 0x375   :  { %v1269_v51 = vpop.eup %958  ;;  %968 = vpow2.f32 %v656_v46  ;;  %v641_v49 = vsub.f32 %v1224_v0, %v617_v50 }
 0x376   :  { %v666_v52 = vmul.f32 1.442695, %v640_v48  ;;  %v687_v53 = vsel %vm581_vm1, %v1269_v51, 0.0  ;;  %v1276_v55 = vpop.eup %960 }
 0x377   :  { %v668_v56 = vmul.f32 1.442695, %v641_v49  ;;  %688 = vadd.xlane.f32.xlu1 %v687_v53  ;;  %679 = vadd.xlane.f32.xlu0 %v678_v54  ;;  %v608_v57 = vpop.xlane.xlu0 %607  ;;  %v681_v63 = vsel %vm581_vm1, %v1276_v55, 0.0 }
 0x378   :  { %970 = vpow2.f32 %v666_v52  ;;  %v638_v58 = vsub.f32 %v1228_v3, %v608_v57  ;;  %v611_v59 = vpop.xlane.xlu1 %610 }
 0x379   :  { %972 = vpow2.f32 %v668_v56  ;;  %v639_v60 = vsub.f32 %v1230_v4, %v611_v59 }
 0x37a   :  { %v1280_v61 = vpop.eup %962  ;;  %v662_v62 = vmul.f32 1.442695, %v638_v58 }
 0x37b   :  { %v1284_v0 = vpop.eup %964  ;;  %v664_v1 = vmul.f32 1.442695, %v639_v60  ;;  %682 = vadd.xlane.f32.xlu1 %v681_v63  ;;  %v620_v2 = vpop.xlane.xlu0 %619  ;;  %v696_v5 = vsel %vm581_vm1, %v1280_v61, 0.0 }
 0x37c   :  { %974 = vpow2.f32 %v662_v62  ;;  %v642_v3 = vsub.f32 %v1238_v10, %v620_v2  ;;  %697 = vadd.xlane.f32.xlu0 %v696_v5  ;;  %v699_v9 = vsel %vm581_vm1, %v1284_v0, 0.0 }
 0x37d   :  { %976 = vpow2.f32 %v664_v1  ;;  %v623_v4 = vpop.xlane.xlu1 %622 }
 0x37e   :  { %v1289_v6 = vpop.eup %966  ;;  %v670_v7 = vmul.f32 1.442695, %v642_v3  ;;  %v643_v8 = vsub.f32 %v1242_v14, %v623_v4 }
 0x37f   :  { %v1294_v11 = vpop.eup %968  ;;  %700 = vadd.xlane.f32.xlu1 %v699_v9  ;;  %v626_v12 = vpop.xlane.xlu0 %625  ;;  %v690_v15 = vsel %vm581_vm1, %v1289_v6, 0.0 }
 0x380   :  { %978 = vpow2.f32 %v670_v7  ;;  %v672_v10 = vmul.f32 1.442695, %v643_v8  ;;  %v644_v17 = vsub.f32 %v1240_v13, %v626_v12  ;;  %691 = vadd.xlane.f32.xlu0 %v690_v15  ;;  %v693_v21 = vsel %vm581_vm1, %v1294_v11, 0.0 }
 0x381   :  { %v629_v18 = vpop.xlane.xlu1 %628 }
 0x382   :  { %v1299_v19 = vpop.eup %970  ;;  %980 = vpow2.f32 %v672_v10  ;;  %v674_v14 = vmul.f32 1.442695, %v644_v17  ;;  %v645_v20 = vsub.f32 %v1246_v16, %v629_v18 }
 0x383   :  { %v1304_v22 = vpop.eup %972  ;;  %694 = vadd.xlane.f32.xlu1 %v693_v21  ;;  %v708_v23 = vsel %vm581_vm1, %v1299_v19, 0.0 }
 0x384   :  { %982 = vpow2.f32 %v674_v14  ;;  %v676_v24 = vmul.f32 1.442695, %v645_v20  ;;  %709 = vadd.xlane.f32.xlu0 %v708_v23  ;;  %v711_v25 = vsel %vm581_vm1, %v1304_v22, 0.0 }
 0x386   :  { %v1308_v13 = vpop.eup %974  ;;  %984 = vpow2.f32 %v676_v24 }
 0x387   :  { %v1312_v26 = vpop.eup %976  ;;  %712 = vadd.xlane.f32.xlu1 %v711_v25  ;;  %v702_v16 = vsel %vm581_vm1, %v1308_v13, 0.0 }
 0x388   :  { %703 = vadd.xlane.f32.xlu0 %v702_v16  ;;  %v705_v28 = vsel %vm581_vm1, %v1312_v26, 0.0 }
 0x38a   :  { %v1316_v27 = vpop.eup %978 }
 0x38b   :  { %706 = vadd.xlane.f32.xlu1 %v705_v28  ;;  %v714_v29 = vsel %vm581_vm1, %v1316_v27, 0.0 }
 0x38c   :  { %v1322_v30 = vpop.eup %980  ;;  %715 = vadd.xlane.f32.xlu0 %v714_v29 }
 0x38d   :  { %v717_v31 = vsel %vm581_vm1, %v1322_v30, 0.0 }
 0x38e   :  { %v1326_v32 = vpop.eup %982 }
 0x38f   :  { %718 = vadd.xlane.f32.xlu1 %v717_v31  ;;  %v720_v33 = vsel %vm581_vm1, %v1326_v32, 0.0 }
 0x390   :  { %v1330_v34 = vpop.eup %984  ;;  %721 = vadd.xlane.f32.xlu0 %v720_v33 }
 0x391   :  { %v723_v35 = vsel %vm581_vm1, %v1330_v34, 0.0 }
 0x393   :  { %724 = vadd.xlane.f32.xlu1 %v723_v35 }
 0x400   :  { %v686_v36 = vpop.xlane.xlu0 %685 }
 0x401   :  { %986 = vrcp.f32 %v686_v36 }
 0x404   :  { %v689_v37 = vpop.xlane.xlu1 %688  ;;  %v680_v38 = vpop.xlane.xlu0 %679 }
 0x405   :  { %988 = vrcp.f32 %v689_v37 }
 0x406   :  { %990 = vrcp.f32 %v680_v38 }
 0x408   :  { %v683_v39 = vpop.xlane.xlu1 %682 }
 0x409   :  { %992 = vrcp.f32 %v683_v39  ;;  %v698_v40 = vpop.xlane.xlu0 %697 }
 0x40a   :  { %994 = vrcp.f32 %v698_v40 }
 0x40b   :  { %v987_v42 = vpop.eup %986 }
 0x40c   :  { %v744_v43 = vmul.f32 %v987_v42, %v1261_v41  ;;  %v701_v44 = vpop.xlane.xlu1 %700 }
 0x40d   :  { %996 = vrcp.f32 %v701_v44  ;;  %v692_v46 = vpop.xlane.xlu0 %691 }
 0x40e   :  { %760 = vst.msk [vmem:[%s1421_s7 + $0x10] sm:$0xff] %vm581_vm1, %v744_v43  ;;  %998 = vrcp.f32 %v692_v46 }
 0x40f   :  { %v989_v47 = vpop.eup %988 }
 0x410   :  { %v991_v48 = vpop.eup %990  ;;  %v745_v50 = vmul.f32 %v989_v47, %v1269_v51  ;;  %v695_v49 = vpop.xlane.xlu1 %694 }
 0x411   :  { %v742_v52 = vmul.f32 %v991_v48, %v1266_v45  ;;  %1000 = vrcp.f32 %v695_v49  ;;  %v710_v53 = vpop.xlane.xlu0 %709 }
 0x412   :  { %761 = vst.msk [vmem:[%s1421_s7 + $0x18] sm:$0xff] %vm581_vm1, %v745_v50  ;;  %1002 = vrcp.f32 %v710_v53 }
 0x413   :  { %v993_v41 = vpop.eup %992  ;;  %758 = vst.msk [vmem:[%s1421_s7] sm:$0xff] %vm581_vm1, %v742_v52 }
 0x414   :  { %v995_v54 = vpop.eup %994  ;;  %v743_v51 = vmul.f32 %v993_v41, %v1276_v55  ;;  %v713_v56 = vpop.xlane.xlu1 %712 }
 0x415   :  { %v748_v45 = vmul.f32 %v995_v54, %v1280_v61  ;;  %1004 = vrcp.f32 %v713_v56  ;;  %v704_v57 = vpop.xlane.xlu0 %703 }
 0x416   :  { %759 = vst.msk [vmem:[%s1421_s7 + $0x8] sm:$0xff] %vm581_vm1, %v743_v51  ;;  %1006 = vrcp.f32 %v704_v57 }
 0x417   :  { %v997_v58 = vpop.eup %996  ;;  %764 = vst.msk [vmem:[%s1421_s7 + $0x30] sm:$0xff] %vm581_vm1, %v748_v45 }
 0x418   :  { %v999_v59 = vpop.eup %998  ;;  %v749_v55 = vmul.f32 %v997_v58, %v1284_v0  ;;  %v707_v60 = vpop.xlane.xlu1 %706 }
 0x419   :  { %v746_v61 = vmul.f32 %v999_v59, %v1289_v6  ;;  %1008 = vrcp.f32 %v707_v60  ;;  %v716_v62 = vpop.xlane.xlu0 %715 }
 0x41a   :  { %765 = vst.msk [vmem:[%s1421_s7 + $0x38] sm:$0xff] %vm581_vm1, %v749_v55  ;;  %1010 = vrcp.f32 %v716_v62 }
 0x41b   :  { %v1001_v63 = vpop.eup %1000  ;;  %762 = vst.msk [vmem:[%s1421_s7 + $0x20] sm:$0xff] %vm581_vm1, %v746_v61 }
 0x41c   :  { %v1003_v1 = vpop.eup %1002  ;;  %v747_v0 = vmul.f32 %v1001_v63, %v1294_v11  ;;  %v719_v2 = vpop.xlane.xlu1 %718 }
 0x41d   :  { %v752_v5 = vmul.f32 %v1003_v1, %v1299_v19  ;;  %1012 = vrcp.f32 %v719_v2  ;;  %v722_v3 = vpop.xlane.xlu0 %721 }
 0x41e   :  { %763 = vst.msk [vmem:[%s1421_s7 + $0x28] sm:$0xff] %vm581_vm1, %v747_v0  ;;  %1014 = vrcp.f32 %v722_v3 }
 0x41f   :  { %v1005_v4 = vpop.eup %1004  ;;  %768 = vst.msk [vmem:[%s1421_s7 + $0x50] sm:$0xff] %vm581_vm1, %v752_v5 }
 0x420   :  { %v1007_v6 = vpop.eup %1006  ;;  %v753_v7 = vmul.f32 %v1005_v4, %v1304_v22  ;;  %v725_v8 = vpop.xlane.xlu1 %724 }
 0x421   :  { %v750_v9 = vmul.f32 %v1007_v6, %v1308_v13  ;;  %1016 = vrcp.f32 %v725_v8 }
 0x422   :  { %769 = vst.msk [vmem:[%s1421_s7 + $0x58] sm:$0xff] %vm581_vm1, %v753_v7 }
 0x423   :  { %v1009_v11 = vpop.eup %1008  ;;  %766 = vst.msk [vmem:[%s1421_s7 + $0x40] sm:$0xff] %vm581_vm1, %v750_v9 }
 0x424   :  { %v1011_v12 = vpop.eup %1010  ;;  %v751_v15 = vmul.f32 %v1009_v11, %v1312_v26 }
 0x425   :  { %v754_v10 = vmul.f32 %v1011_v12, %v1316_v27 }
 0x426   :  { %767 = vst.msk [vmem:[%s1421_s7 + $0x48] sm:$0xff] %vm581_vm1, %v751_v15 }
 0x427   :  { %v1013_v17 = vpop.eup %1012  ;;  %770 = vst.msk [vmem:[%s1421_s7 + $0x60] sm:$0xff] %vm581_vm1, %v754_v10 }
 0x428   :  { %v1015_v18 = vpop.eup %1014  ;;  %v755_v19 = vmul.f32 %v1013_v17, %v1322_v30 }
 0x429   :  { %v756_v14 = vmul.f32 %v1015_v18, %v1326_v32 }
 0x42a   :  { %771 = vst.msk [vmem:[%s1421_s7 + $0x68] sm:$0xff] %vm581_vm1, %v755_v19 }
 0x42b   :  { %v1017_v20 = vpop.eup %1016  ;;  %772 = vst.msk [vmem:[%s1421_s7 + $0x70] sm:$0xff] %vm581_vm1, %v756_v14 }
 0x42c   :  { %v757_v21 = vmul.f32 %v1017_v20, %v1330_v34 }
 0x42e   :  { %773 = vst.msk [vmem:[%s1421_s7 + $0x78] sm:$0xff] %vm581_vm1, %v757_v21 }

</bundles_post_ra>
